<compile_context>
chip_gen: v6e
topology: v6e:2x2x1
jax: 0.10.0
libtpu: 0.0.40
codegen_flags: <defaults>
</compile_context>

<pallas_src>
import math

import jax
import jax.numpy as jnp
from jax import lax
from jax.experimental import pallas as pl
from jax.experimental.pallas import tpu as pltpu


# ---------------------------------------------------------------------------
# Kernels
# ---------------------------------------------------------------------------

def _ip_bias_kernel(x_ref, w_ref, b_ref, o_ref):
    # grid = (M/tm, N/tn, K/tk); K (reduction) is the last, "arbitrary" axis.
    # o_ref's block index is constant across k, so it stays resident in VMEM and
    # doubles as the f32 accumulator (no separate scratch, no final copy).
    @pl.when(pl.program_id(2) == 0)
    def _():
        o_ref[...] = jnp.zeros_like(o_ref)

    # weight tile is in native (tn, tk) layout: contract last dims (x @ w.T).
    o_ref[...] += lax.dot_general(
        x_ref[...], w_ref[...],
        dimension_numbers=(((1,), (1,)), ((), ())),
        preferred_element_type=jnp.float32,
    )

    @pl.when(pl.program_id(2) == pl.num_programs(2) - 1)
    def _():
        # Module semantics: output = linear(x, W) - bias  (bias SUBTRACTED).
        o_ref[...] -= b_ref[...]


def _ip_nobias_kernel(x_ref, w_ref, o_ref):
    @pl.when(pl.program_id(2) == 0)
    def _():
        o_ref[...] = jnp.zeros_like(o_ref)

    o_ref[...] += lax.dot_general(
        x_ref[...], w_ref[...],
        dimension_numbers=(((1,), (1,)), ((), ())),
        preferred_element_type=jnp.float32,
    )


# ---------------------------------------------------------------------------
# Tile selection
# ---------------------------------------------------------------------------

def _round_up(x, m):
    return (x + m - 1) // m * m


def _cdiv(a, b):
    return -(-a // b)


def _pick_tiles(M, N, K, itemsize, budget_bytes=12 << 20):
    """Pick (tm, tn, tk):
    - collapse small problems into 1-2 grid steps,
    - lane dims (tn, tk) multiples of 128 (>=256 when the problem allows, for
      the 256-wide MXU on v6e/v7x),
    - keep double-buffered inputs + resident f32 output tile under budget_bytes
      (fits v5e's 16 MiB scoped-VMEM default and v7x's 64 MiB physical VMEM),
    - prefer growing tm before tn for large M (cuts redundant weight streaming),
    - keep >=2 iterations on a parallel grid axis when possible (v7x: 2 TCs).
    """
    sub = 8 if itemsize >= 4 else 16   # sublane granularity (f32 / bf16)

    def fits(tm, tn, tk):
        vmem = 2 * (tm * tk + tn * tk) * itemsize   # double-buffered inputs
        vmem += 2 * tm * tn * 4                     # output tile (f32)
        vmem += 2 * tn * 4                          # bias tile
        return vmem <= budget_bytes

    tm = _round_up(min(M, 512), sub)
    tn = _round_up(min(N, 512), 128)
    tk = _round_up(min(K, 2048), 128)

    while not fits(tm, tn, tk):
        if tk > 512:
            tk = max(512, tk // 2)
        elif tn > 256:
            tn = max(256, tn // 2)
        elif tm > 128:
            tm = max(128, tm // 2)
        elif tk > 128:
            tk //= 2
        elif tn > 128:
            tn //= 2
        else:
            tm = max(sub, _round_up(tm // 2, sub))

    # Don't leave a second TensorCore idle on v7x: if both parallel axes would
    # have a single iteration, split the N axis in two.
    if _cdiv(M, tm) == 1 and _cdiv(N, tn) == 1 and N > 128:
        tn = _round_up(_cdiv(N, 2), 128)

    return tm, tn, tk


# ---------------------------------------------------------------------------
# Wrapper
# ---------------------------------------------------------------------------

def inner_product_forward(x, weight, bias=None, *, tm=None, tn=None, tk=None,
                          compute_dtype=None):
    """output = x @ weight.T - bias.

    x: (M, K), weight: (N, K) [native torch layout], bias: (N,) or None.
    compute_dtype: e.g. jnp.bfloat16 to run the MXU in bf16 with f32 accumulation
    (f32 path by default, matching the torch module's numerics).
    Returns (M, N) float32.
    """
    M, K = x.shape
    N, K2 = weight.shape
    assert K == K2, "weight must be (out_features, in_features)"

    if compute_dtype is not None:
        x = x.astype(compute_dtype)
        weight = weight.astype(compute_dtype)
    itemsize = jnp.dtype(x.dtype).itemsize

    atm, atn, atk = _pick_tiles(M, N, K, itemsize)
    tm = atm if tm is None else tm
    tn = atn if tn is None else tn
    tk = atk if tk is None else tk

    # Zero-pad to tile multiples: exact for a matmul (zero K columns contribute
    # nothing; extra M rows / N columns are sliced off below). Avoids the
    # silent partial-K-block corruption of cdiv-only grids.
    Mp, Np, Kp = _round_up(M, tm), _round_up(N, tn), _round_up(K, tk)
    if (Mp, Kp) != (M, K):
        x = jnp.pad(x, ((0, Mp - M), (0, Kp - K)))
    if (Np, Kp) != (N, K):
        weight = jnp.pad(weight, ((0, Np - N), (0, Kp - K)))

    grid = (Mp // tm, Np // tn, Kp // tk)

    in_specs = [
        pl.BlockSpec((tm, tk), lambda i, j, k: (i, k)),   # x tile
        pl.BlockSpec((tn, tk), lambda i, j, k: (j, k)),   # weight tile (native layout)
    ]
    operands = [x, weight]

    if bias is not None:
        b2d = jnp.asarray(bias, jnp.float32).reshape(1, N)
        if Np != N:
            b2d = jnp.pad(b2d, ((0, 0), (0, Np - N)))
        in_specs.append(pl.BlockSpec((1, tn), lambda i, j, k: (0, j)))
        operands.append(b2d)
        kernel = _ip_bias_kernel
    else:
        kernel = _ip_nobias_kernel

    # Working set: double-buffered input tiles + resident f32 output tile.
    vmem_bytes = 2 * (tm * tk + tn * tk) * itemsize + 2 * tm * tn * 4 + 2 * tn * 4
    vmem_limit = int(min(max(2 * vmem_bytes + (4 << 20), 16 << 20), 48 << 20))

    out = pl.pallas_call(
        kernel,
        out_shape=jax.ShapeDtypeStruct((Mp, Np), jnp.float32),
        grid_spec=pltpu.PrefetchScalarGridSpec(
            num_scalar_prefetch=0,
            grid=grid,
            in_specs=in_specs,
            out_specs=pl.BlockSpec((tm, tn), lambda i, j, k: (i, j)),
        ),
        compiler_params=pltpu.CompilerParams(
            dimension_semantics=("parallel", "parallel", "arbitrary"),
            vmem_limit_bytes=vmem_limit,
        ),
    )(*operands)

    if (Mp, Np) != (M, N):
        out = out[:M, :N]
    return out


# ---------------------------------------------------------------------------
# Parameter init (reproduces reset_parameters for the common paths)
# ---------------------------------------------------------------------------

def init_inner_product_params(key, in_features, out_features,
                              bias_mode="diverse", bias_init_mode=0,
                              bias_init_mean=0.0):
    """kaiming_uniform_(a=sqrt(5)) weight; bias_init_mode=0 ('diverse') or
    'unified' / False bias paths."""
    kw, kb = jax.random.split(key)
    fan_in = in_features
    # kaiming_uniform with a=sqrt(5): bound = sqrt(6/((1+a^2)*fan_in)) = 1/sqrt(fan_in)
    w_bound = 1.0 / math.sqrt(fan_in)
    weight = jax.random.uniform(
        kw, (out_features, in_features), jnp.float32, -w_bound, w_bound)
    if bias_mode is False:
        bias = None
    elif bias_mode == "unified":
        bias = jnp.broadcast_to(
            jnp.asarray(float(bias_init_mode) + bias_init_mean, jnp.float32),
            (out_features,))
    elif bias_mode == "diverse":
        # TODO(synk): bias_init_mode 1-7 are pure init-time glue; add if needed.
        assert bias_init_mode == 0
        b_bound = 1.0 / math.sqrt(fan_in)
        bias = jax.random.uniform(
            kb, (out_features,), jnp.float32, -b_bound, b_bound) + bias_init_mean
    else:
        raise AttributeError("bias should be one of False, unified, or diverse")
    return weight, bias


# ---------------------------------------------------------------------------
# Self-check
# ---------------------------------------------------------------------------

if __name__ == "__main__":
    key = jax.random.PRNGKey(0)
    k_param, k_x, k_param2, k_x2 = jax.random.split(key, 4)

    # 1) aligned shapes, f32 path, diverse bias
    M, K, N = 16, 256, 512
    weight, bias = init_inner_product_params(k_param, K, N)
    x = jax.random.normal(k_x, (M, K), jnp.float32)
    out = jax.block_until_ready(inner_product_forward(x, weight, bias))
    ref = x @ weight.T - bias[None, :]
    assert out.shape == (M, N)
    assert jnp.allclose(out, ref, atol=2e-4, rtol=1e-4)

    # 2) ragged shapes (exercise padding / remainder handling), diverse bias
    M2, K2, N2 = 7, 100, 53
    weight2, bias2 = init_inner_product_params(k_param2, K2, N2)
    x2 = jax.random.normal(k_x2, (M2, K2), jnp.float32)
    out2 = jax.block_until_ready(inner_product_forward(x2, weight2, bias2))
    ref2 = x2 @ weight2.T - bias2[None, :]
    assert out2.shape == (M2, N2)
    assert jnp.allclose(out2, ref2, atol=2e-4, rtol=1e-4)

    # 3) bias=None path (no-bias kernel variant)
    out3 = jax.block_until_ready(inner_product_forward(x, weight, None))
    assert jnp.allclose(out3, x @ weight.T, atol=2e-4, rtol=1e-4)

    # 4) bf16 MXU path with f32 accumulation (looser tolerance)
    out4 = jax.block_until_ready(
        inner_product_forward(x, weight, bias, compute_dtype=jnp.bfloat16))
    assert jnp.allclose(out4, ref, atol=5e-2, rtol=5e-2)

    print("KERNEL_OK")
</pallas_src>

<mosaic_0001>
module attributes {stable_mosaic.version = 11 : i64} {
  func.func @_ip_bias_kernel(%arg0: i32, %arg1: i32, %arg2: i32, %arg3: memref<16x256xf32, #tpu.memory_space<vmem>>, %arg4: memref<256x256xf32, #tpu.memory_space<vmem>>, %arg5: memref<1x256xf32, #tpu.memory_space<vmem>>, %arg6: memref<16x256xf32, #tpu.memory_space<vmem>>) attributes {dimension_semantics = [#tpu.dimension_semantics<parallel>, #tpu.dimension_semantics<parallel>, #tpu.dimension_semantics<arbitrary>], iteration_bounds = array<i64: 1, 2, 1>, scalar_prefetch = 0 : i64, scratch_operands = 0 : i64, tpu.core_type = #tpu.core_type<tc>, window_params = [{transform_indices = @transform_0, window_bounds = array<i64: 16, 256>}, {transform_indices = @transform_1, window_bounds = array<i64: 256, 256>}, {transform_indices = @transform_2, window_bounds = array<i64: 1, 256>}, {transform_indices = @transform_3, window_bounds = array<i64: 16, 256>}]} {
    %c0_i32 = arith.constant 0 : i32
    %0 = arith.cmpi eq, %arg2, %c0_i32 : i32
    %1 = arith.extui %0 : i1 to i32
    %c0_i32_0 = arith.constant 0 : i32
    %2 = arith.cmpi ne, %1, %c0_i32_0 : i32
    scf.if %2 {
      %cst_10 = arith.constant 0.000000e+00 : f32
      %12 = vector.broadcast %cst_10 : f32 to vector<16x256xf32>
      %c0_11 = arith.constant 0 : index
      %c0_12 = arith.constant 0 : index
      %13 = vector.load %arg6[%c0_11, %c0_12] : memref<16x256xf32, #tpu.memory_space<vmem>>, vector<16x256xf32>
      tpu.vector_store %arg6[%c0_11, %c0_12], %12 {strides = array<i32>} : memref<16x256xf32, #tpu.memory_space<vmem>>, vector<16x256xf32>,
    } else {
    }
    %c0 = arith.constant 0 : index
    %c0_1 = arith.constant 0 : index
    %3 = vector.load %arg6[%c0, %c0_1] : memref<16x256xf32, #tpu.memory_space<vmem>>, vector<16x256xf32>
    %c0_2 = arith.constant 0 : index
    %c0_3 = arith.constant 0 : index
    %4 = vector.load %arg3[%c0_2, %c0_3] : memref<16x256xf32, #tpu.memory_space<vmem>>, vector<16x256xf32>
    %c0_4 = arith.constant 0 : index
    %c0_5 = arith.constant 0 : index
    %5 = vector.load %arg4[%c0_4, %c0_5] : memref<256x256xf32, #tpu.memory_space<vmem>>, vector<256x256xf32>
    %cst = arith.constant dense<0.000000e+00> : vector<16x256xf32>
    %6 = tpu.matmul %4, %5, %cst {dimension_numbers = #tpu.dot_dimension_numbers<[1], [1], [0], [0], [0, 0, 1, 0], [], []>} : vector<16x256xf32>, vector<256x256xf32>, vector<16x256xf32> -> vector<16x256xf32>
    %7 = arith.addf %3, %6 : vector<16x256xf32>
    %c0_6 = arith.constant 0 : index
    %c0_7 = arith.constant 0 : index
    %8 = vector.load %arg6[%c0_6, %c0_7] : memref<16x256xf32, #tpu.memory_space<vmem>>, vector<16x256xf32>
    tpu.vector_store %arg6[%c0_6, %c0_7], %7 {strides = array<i32>} : memref<16x256xf32, #tpu.memory_space<vmem>>, vector<16x256xf32>,
    %c0_i32_8 = arith.constant 0 : i32
    %9 = arith.cmpi eq, %arg2, %c0_i32_8 : i32
    %10 = arith.extui %9 : i1 to i32
    %c0_i32_9 = arith.constant 0 : i32
    %11 = arith.cmpi ne, %10, %c0_i32_9 : i32
    scf.if %11 {
      %c0_10 = arith.constant 0 : index
      %c0_11 = arith.constant 0 : index
      %12 = vector.load %arg6[%c0_10, %c0_11] : memref<16x256xf32, #tpu.memory_space<vmem>>, vector<16x256xf32>
      %c0_12 = arith.constant 0 : index
      %c0_13 = arith.constant 0 : index
      %13 = vector.load %arg5[%c0_12, %c0_13] : memref<1x256xf32, #tpu.memory_space<vmem>>, vector<1x256xf32>
      %14 = vector.broadcast %13 : vector<1x256xf32> to vector<16x256xf32>
      %15 = arith.subf %12, %14 : vector<16x256xf32>
      %c0_14 = arith.constant 0 : index
      %c0_15 = arith.constant 0 : index
      %16 = vector.load %arg6[%c0_14, %c0_15] : memref<16x256xf32, #tpu.memory_space<vmem>>, vector<16x256xf32>
      tpu.vector_store %arg6[%c0_14, %c0_15], %15 {strides = array<i32>} : memref<16x256xf32, #tpu.memory_space<vmem>>, vector<16x256xf32>,
    } else {
    }
    return
  }
  func.func @transform_0(%arg0: i32, %arg1: i32, %arg2: i32) -> (i32, i32) {
    %c0_i32 = arith.constant 0 : i32
    return %arg0, %arg2 : i32, i32
  }
  func.func @transform_1(%arg0: i32, %arg1: i32, %arg2: i32) -> (i32, i32) {
    %c0_i32 = arith.constant 0 : i32
    return %arg1, %arg2 : i32, i32
  }
  func.func @transform_2(%arg0: i32, %arg1: i32, %arg2: i32) -> (i32, i32) {
    %c0_i32 = arith.constant 0 : i32
    %c0_i32_0 = arith.constant 0 : i32
    return %c0_i32, %arg1 : i32, i32
  }
  func.func @transform_3(%arg0: i32, %arg1: i32, %arg2: i32) -> (i32, i32) {
    %c0_i32 = arith.constant 0 : i32
    return %arg0, %arg1 : i32, i32
  }
}

</mosaic_0001>

<bundles_post_ra>
// kernel: tpu_custom_call.1
= control target key start
LH: loop header
LB: loop body
LE: loop exit
PB: predicated region body
PF: predicated region fallthrough
CT: control target
= control target key end

     0   :  { %8 = vsyncpa [#allocation3], 0  ;;  %s1260_s0 = inlined_call_operand.hbm [shape: f32[16,256], index: 0, kind: input, shape index: {}]   ;;  %s1261_s1 = inlined_call_operand.hbm [shape: f32[512,256], index: 1, kind: input, shape index: {}]   ;;  %s1262_s2 = inlined_call_operand.hbm [shape: f32[1,512], index: 2, kind: input, shape index: {}]   ;;  %s1263_s3 = inlined_call_operand.hbm [shape: f32[16,512], index: 3, kind: output, shape index: {}]  }
   0x1   :  { %9 = vsyncpa [#allocation6], 0 }
   0x2   :  { %11 = vsyncpa [#allocation6 + $0x1], 0 }
   0x3   :  { %12 = vsyncpa [#allocation4], 0 }
   0x4   :  { %14 = vsyncpa [#allocation4 + $0x1], 0  ;;  %s992_s12 = smov 0   ;;  %s994_s13 = smov 0  }
   0x5   :  { %s996_s14 = smov 0   ;;  %s998_s15 = smov 0  }
   0x6   :  { %s1000_s16 = smov 0   ;;  %s1002_s17 = smov 0  }
   0x7 LB: > { %s35_s18 = sadd.s32 1, %s957_s16  ;;  %s76_s19 = sadd.s32 1, %s949_s14  ;;  %s961_s17 = sphi %s1002_s17, %s20_s17   ;;  %s957_s16 = sphi %s1000_s16, %s1287_s16   ;;  %s953_s15 = sphi %s998_s15, %s1286_s15   ;;  %s949_s14 = sphi %s996_s14, %s1285_s14   ;;  %s945_s13 = sphi %s994_s13, %s1284_s13   ;;  %s941_s12 = sphi %s992_s12, %s1283_s12  }
   0x8   : > { %p37_p0 = scmp.ge.s32.totalorder %s35_s18, 2  ;;  %p83_p1 = scmp.ne.s32.totalorder %s949_s14, %s945_s13 }
   0x9   : > { %p84_p2 = scmp.eq.s32.totalorder %s961_s17, 0  ;;  %p737_p6 = scmp.lt.s32.totalorder %s961_s17, 2 }
   0xa   : > { %s1289_s18 = smov (%p37_p0, %s35_s18), 0  ;;  %s186_s22 = sand.u32 1, %s961_s17  }
   0xb   : > { %p1032_p3 = por %p84_p2, %p83_p1  ;;  %s71_s21 = ssub.s32 %s957_s16, %s1289_s18 }
   0xc   : > { %p74_p5 = scmp.eq.s32.totalorder %s71_s21, 0  ;;  %s188_s23 = sand.u32 1, %s949_s14  }
   0xd   : > { %s626_s25 = sshll.u32 %s188_s23, 9  ;;  %s644_s26 = sshll.u32 %s957_s16, 13 }
   0xe   : > { %s1043_s24 = scalar_select %p74_p5, %s949_s14, %s76_s19  }
   0xf   : > { %s199_s29 = scalar_lea.hbm %s1261_s1, %s644_s26  ;;  %s190_s30 = scalar_lea.vmem [#allocation5], %s626_s25 }
  0x10   : > { %s200_s4 = sshll.u32 %s190_s30, 4  ;;  %p1053_p7 = pnand %p737_p6, %p1032_p3  ;;  %s201_s4 = int_to_ptr.vmem [resolvable:$true] %s200_s4 }
  0x11   : > { %s1057_s6 = scalar_lea.sflag [#allocation6], %s186_s22  ;;  %s808_s7 = scalar_lea.vmem %s201_s4, 8192 }
  0x12   : > { %p1265_p8 = pneg %p1053_p7  ;;  %p809_p9 = scmp.ne.s32.totalorder %s201_s4, %s808_s7 }
  0x13   : > { %s963_s8 = smov [#allocation5]  }
  0x14   : > { %p811_p10 = pnand %p809_p9, %p1265_p8  ;;  %s813_s9 = sshll.u32 %s963_s8, 4  ;;  %s814_s9 = int_to_ptr.vmem [resolvable:$false] %s813_s9 }
  0x15   : > { %s815_s10 = scalar_lea.vmem %s814_s9, 16384  ;;  %p816_p12 = scmp.lt.s32.totalorder %s201_s4, %s814_s9 }
  0x16   : > { %p812_p11 = pneg %p811_p10  ;;  %p817_p13 = scmp.lt.s32.totalorder %s815_s10, %s808_s7 }
  0x18   : > { %p818_p0 = por %p817_p13, %p816_p12 }
  0x1a   : > { %p819_p2 = pnand %p818_p0, %p812_p11 }
  0x1c   : > { %822 = shalt.err (!%p819_p2)
}
  0x1d   : > { %s1264_s11 = smov 256   ;;  %s965_s19 = smov 16  }
  0x1e   : > { %728 = dma.hbm_to_vmem [thread:$0]  (!%p1053_p7), %s199_s29, 8192, %s201_s4, %s1057_s6, %s1264_s11, %s1264_s11, %s965_s19  }
  0x1f   : > { %s1071_s20 = sadd.s32 4294967295, %s961_s17   ;;  %s622_s21 = sadd.s32 4294967294, %s961_s17  }
  0x20   : > { %p89_p3 = scmp.ne.s32.totalorder %s945_s13, %s941_s12  ;;  %p1267_p5 = scmp.eq.s32.totalorder %s1071_s20, 0 }
  0x21   : > { %p141_p6 = scmp.eq.s32.totalorder %s1071_s20, 1  ;;  %p147_p9 = scmp.eq.s32.totalorder %s622_s21, 1 }
  0x22   : > { %p623_p10 = scmp.ge.s32.totalorder %s961_s17, 1  ;;  %p1081_p11 = por %p1267_p5, %p89_p3 }
  0x23   : > { %p1088_p12 = por %p141_p6, %p83_p1  ;;  %p1092_p13 = por %p147_p9, %p89_p3 }
  0x24   : > { %s1271_s22 = scalar_select %p1081_p11, 1, 0 }
  0x25   : > { %s1272_s25 = scalar_select %p1088_p12, 1, 0 }
  0x26   : > { %s1273_s26 = scalar_select %p1092_p13, 1, 0 }
  0x27   : > { %p154_p0 = scmp.lt.s32.totalorder %s961_s17, 3  ;;  %s966_s28 = smov [#allocation2]  }
  0x28   : > { %s172_s29 = sshll.u32 %s966_s28, 4  ;;  %s630_s30 = sshll.u32 %s188_s23, 1  ;;  %s173_s29 = int_to_ptr.vmem [resolvable:$true] %s172_s29 }
  0x29   : > { %p1097_p2 = pnand %p623_p10, %p154_p0  ;;  %s645_s4 = sshll.u32 %s957_s16, 5 }
  0x2a   : > { %s214_s7 = scalar_lea.vmem [#allocation7], %s630_s30  ;;  %s220_s21 = scalar_lea.hbm %s1262_s2, %s645_s4 }
  0x2b   : > { %p721_p4 = pneg %p1097_p2  ;;  %s222_s8 = sshll.u32 %s214_s7, 4  ;;  %s223_s8 = int_to_ptr.vmem [resolvable:$true] %s222_s8 }
  0x2c   : > { %s834_s11 = scalar_lea.vmem %s173_s29, 512  ;;  %p842_p0 = scmp.lt.s32.totalorder %s173_s29, %s173_s29 }
  0x2d   : > { %p722_p1 = pnand %p721_p4, %p1267_p5  ;;  %p835_p6 = scmp.ne.s32.totalorder %s173_s29, %s834_s11 }
  0x2e   : > { %p843_p8 = scmp.lt.s32.totalorder %s834_s11, %s834_s11 }
  0x2f   : > { %p825_p3 = pneg %p722_p1 }
  0x30   : > { %p844_p13 = por %p843_p8, %p842_p0 }
  0x31   : > { %p837_p9 = pnand %p835_p6, %p825_p3 }
  0x33   : > { %p838_p10 = pneg %p837_p9 }
  0x35   : > { %p845_p12 = pnand %p844_p13, %p838_p10 }
  0x37   : > { %848 = shalt.err (!%p845_p12)
}
  0x38   : > { %s1275_s23 = smov 256   ;;  %s862_s4 = scalar_lea.vmem %s223_s8, 32 }
  0x39   : > { %724 = dma.hbm_to_vmem [thread:$0]  (!%p722_p1), %s1260_s0, 512, %s173_s29, [#allocation3], %s1275_s23, %s1275_s23, %s965_s19  }
  0x3a   : > { %p863_p4 = scmp.ne.s32.totalorder %s223_s8, %s862_s4  ;;  %p1276_p5 = pneg %p1053_p7 }
  0x3b   : > { %s967_s7 = smov [#allocation7]  }
  0x3c   : > { %p865_p11 = pnand %p863_p4, %p1276_p5  ;;  %s867_s9 = sshll.u32 %s967_s7, 4  ;;  %s868_s9 = int_to_ptr.vmem [resolvable:$false] %s867_s9 }
  0x3d   : > { %s869_s11 = scalar_lea.vmem %s868_s9, 64  ;;  %p870_p8 = scmp.lt.s32.totalorder %s223_s8, %s868_s9 }
  0x3e   : > { %p866_p3 = pneg %p865_p11  ;;  %p871_p12 = scmp.lt.s32.totalorder %s869_s11, %s862_s4 }
  0x40   : > { %p872_p13 = por %p871_p12, %p870_p8 }
  0x42   : > { %p873_p6 = pnand %p872_p13, %p866_p3 }
  0x44   : > { %876 = shalt.err (!%p873_p6)
}
  0x45   : > { %731 = dma.hbm_to_vmem [thread:$0]  (!%p1053_p7), %s220_s21, 32, %s223_s8, %s1057_s6  }
  0x46   : > { %231 = sbr.rel (%p1097_p2) target bundleno = 422 (0x1a6), region = 32  ;;  %p1277_p1 = scmp.eq.s32.totalorder (!%p1097_p2), %s1071_s20, 0 }
  0x4b   : > { %928 = dma.done.wait (%p1277_p1), [#allocation3], 512   ;;  %p1278_p5 = pmov %p1277_p1 }
  0x4c   : > { %s237_s19 = sand.u32 1, %s1071_s20   ;;  %s1131_s29 = sand.u32 1, %s945_s13  }
  0x4d   : > { %930 = vsyncadd (%p1278_p5), [#allocation3], 4294966784  ;;  %s635_s10 = sshll.u32 %s1131_s29, 9  ;;  %s238_s5 = scalar_lea.sflag [#allocation6], %s237_s19 }
  0x4e   : > { %s1134_s23 = scalar_lea.vmem [#allocation5], %s635_s10  ;;  %p1279_p7 = scmp.ne.s32.totalorder %s1271_s22, 0 }
  0x50   : > { %932 = dma.done.wait (%p1279_p7), %s238_s5, 8224  }
  0x51   : > { %934 = vsyncadd (%p1279_p7), %s238_s5, 4294959072  ;;  %v332_v0 = vld [vmem:[%s1134_s23 + $0xf8] sm:$0xff]  ;;  %v331_v1 = vld [vmem:[%s1134_s23 + $0xf0] sm:$0xff]  ;;  %s636_s6 = sshll.u32 %s1131_s29, 1  ;;  %s637_s20 = sshll.u32 %s1131_s29, 5 }
  0x52   : > { %v330_v2 = vld [vmem:[%s1134_s23 + $0xe8] sm:$0xff]  ;;  %365 = vmatprep.subr.mxu0 %v332_v0  ;;  %647 = vmatprep.subr.mxu1 %v332_v0  ;;  %v329_v3 = vld [vmem:[%s1134_s23 + $0xe0] sm:$0xff]  ;;  %v328_v4 = vld [vmem:[%s1134_s23 + $0xd8] sm:$0xff]  ;;  %s250_s22 = scalar_lea.vmem [#allocation7], %s636_s6  ;;  %s646_s27 = sshll.u32 %s953_s15, 8 }
  0x53   : > { %366 = vmatpush1.xpose.msra.mxu0 %v331_v1  ;;  %679 = vmatpush1.xpose.msra.mxu1 %v331_v1  ;;  %v327_v5 = vld [vmem:[%s1134_s23 + $0xd0] sm:$0xff]  ;;  %v326_v6 = vld [vmem:[%s1134_s23 + $0xc8] sm:$0xff]  ;;  %v325_v7 = vld [vmem:[%s1134_s23 + $0xc0] sm:$0xff]  ;;  %s277_s8 = scalar_lea.vmem [#allocation8], %s637_s20  ;;  %s1210_s4 = scalar_lea.hbm %s1263_s3, %s646_s27 }
  0x54   : > { %367 = vmatprep.subr.mxu0 %v330_v2  ;;  %648 = vmatprep.subr.mxu1 %v330_v2  ;;  %v324_v8 = vld [vmem:[%s1134_s23 + $0xb8] sm:$0xff]  ;;  %v323_v9 = vld [vmem:[%s1134_s23 + $0xb0] sm:$0xff]  ;;  %v322_v10 = vld [vmem:[%s1134_s23 + $0xa8] sm:$0xff]  ;;  %s494_s21 = sshll.u32 %s277_s8, 4  ;;  %s478_s15 = scalar_lea.sflag [#allocation4], %s1131_s29  ;;  %s1212_s21 = int_to_ptr.vmem [resolvable:$true] %s494_s21 }
  0x55   : > { %v321_v11 = vld [vmem:[%s1134_s23 + $0xa0] sm:$0xff]  ;;  %v320_v12 = vld [vmem:[%s1134_s23 + $0x98] sm:$0xff]  ;;  %v298_v13 = vld [vmem:[#allocation2 + $0x8] sm:$0xff]  ;;  %s877_s7 = scalar_lea.vmem %s1212_s21, 512  ;;  %p1280_p2 = scmp.ne.s32.totalorder %s1272_s25, 0 }
  0x56   : > { %v300_v14 = vld [vmem:[#allocation2 + $0x18] sm:$0xff]  ;;  %v319_v15 = vld [vmem:[%s1134_s23 + $0x90] sm:$0xff]  ;;  %v318_v16 = vld [vmem:[%s1134_s23 + $0x88] sm:$0xff]  ;;  %429 = vmatprep.mubr.f32.mxu0 %v298_v13  ;;  %p878_p11 = scmp.ne.s32.totalorder %s1212_s21, %s877_s7  ;;  %s968_s9 = smov [#allocation8]  }
  0x57   : > { %368 = vmatpush1.xpose.msra.mxu0 %v329_v3  ;;  %680 = vmatpush1.xpose.msra.mxu1 %v329_v3  ;;  %v317_v17 = vld [vmem:[%s1134_s23 + $0x80] sm:$0xff]  ;;  %v316_v18 = vld [vmem:[%s1134_s23 + $0x78] sm:$0xff]  ;;  %v315_v19 = vld [vmem:[%s1134_s23 + $0x70] sm:$0xff]  ;;  %s881_s11 = sshll.u32 %s968_s9, 4  ;;  %s882_s11 = int_to_ptr.vmem [resolvable:$false] %s881_s11 }
  0x58   : > { %369 = vmatprep.subr.mxu0 %v328_v4  ;;  %649 = vmatprep.subr.mxu1 %v328_v4  ;;  %v314_v20 = vld [vmem:[%s1134_s23 + $0x68] sm:$0xff]  ;;  %v313_v21 = vld [vmem:[%s1134_s23 + $0x60] sm:$0xff]  ;;  %v312_v22 = vld [vmem:[%s1134_s23 + $0x58] sm:$0xff]  ;;  %v459_v4 = vlaneseq  ;;  %p879_p9 = pnand %p878_p11, %p1280_p2  ;;  %s883_s19 = scalar_lea.vmem %s882_s11, 1024 }
  0x59   : > { %435 = vmatprep.mubr.f32.mxu1 %v300_v14  ;;  %v311_v23 = vld [vmem:[%s1134_s23 + $0x50] sm:$0xff]  ;;  %v310_v24 = vld [vmem:[%s1134_s23 + $0x48] sm:$0xff]  ;;  %v309_v25 = vld [vmem:[%s1134_s23 + $0x40] sm:$0xff]  ;;  %p884_p0 = scmp.lt.s32.totalorder %s1212_s21, %s882_s11  ;;  %p885_p4 = scmp.lt.s32.totalorder %s883_s19, %s877_s7 }
  0x5a   : > { %v308_v26 = vld [vmem:[%s1134_s23 + $0x38] sm:$0xff]  ;;  %v307_v27 = vld [vmem:[%s1134_s23 + $0x30] sm:$0xff]  ;;  %v306_v28 = vld [vmem:[%s1134_s23 + $0x28] sm:$0xff]  ;;  %p880_p10 = pneg %p879_p9 }
  0x5b   : > { %370 = vmatpush1.xpose.msra.mxu0 %v327_v5  ;;  %681 = vmatpush1.xpose.msra.mxu1 %v327_v5  ;;  %v305_v29 = vld [vmem:[%s1134_s23 + $0x20] sm:$0xff]  ;;  %v304_v30 = vld [vmem:[%s1134_s23 + $0x18] sm:$0xff]  ;;  %v303_v31 = vld [vmem:[%s1134_s23 + $0x10] sm:$0xff]  ;;  %v460_v5 = vshrl.u32 %v459_v4, 7  ;;  %p886_p3 = por %p885_p4, %p884_p0 }
  0x5c   : > { %371 = vmatprep.subr.mxu0 %v326_v6  ;;  %650 = vmatprep.subr.mxu1 %v326_v6  ;;  %v302_v32 = vld [vmem:[%s1134_s23 + $0x8] sm:$0xff]  ;;  %v301_v33 = vld [vmem:[%s1134_s23] sm:$0xff]  ;;  %v364_v34 = vld [vmem:[%s1134_s23 + $0x1f8] sm:$0xff] }
  0x5d   : > { %v363_v35 = vld [vmem:[%s1134_s23 + $0x1f0] sm:$0xff]  ;;  %v362_v36 = vld [vmem:[%s1134_s23 + $0x1e8] sm:$0xff]  ;;  %v361_v37 = vld [vmem:[%s1134_s23 + $0x1e0] sm:$0xff]  ;;  %v461_v6 = vsub.s32 0, %v460_v5  ;;  %p887_p8 = pnand %p886_p3, %p880_p10 }
  0x5e   : > { %v360_v38 = vld [vmem:[%s1134_s23 + $0x1d8] sm:$0xff]  ;;  %v359_v39 = vld [vmem:[%s1134_s23 + $0x1d0] sm:$0xff]  ;;  %v358_v40 = vld [vmem:[%s1134_s23 + $0x1c8] sm:$0xff] }
  0x5f   : > { %372 = vmatpush1.xpose.msra.mxu0 %v325_v7  ;;  %682 = vmatpush1.xpose.msra.mxu1 %v325_v7  ;;  %v357_v41 = vld [vmem:[%s1134_s23 + $0x1c0] sm:$0xff]  ;;  %v356_v42 = vld [vmem:[%s1134_s23 + $0x1b8] sm:$0xff]  ;;  %v355_v43 = vld [vmem:[%s1134_s23 + $0x1b0] sm:$0xff] }
  0x60   : > { %373 = vmatprep.subr.mxu0 %v324_v8  ;;  %651 = vmatprep.subr.mxu1 %v324_v8  ;;  %v354_v44 = vld [vmem:[%s1134_s23 + $0x1a8] sm:$0xff]  ;;  %v353_v45 = vld [vmem:[%s1134_s23 + $0x1a0] sm:$0xff]  ;;  %v352_v46 = vld [vmem:[%s1134_s23 + $0x198] sm:$0xff]  ;;  %v465_v8 = vsub.s32 1, %v460_v5 }
  0x61   : > { %v351_v47 = vld [vmem:[%s1134_s23 + $0x190] sm:$0xff]  ;;  %v350_v48 = vld [vmem:[%s1134_s23 + $0x188] sm:$0xff]  ;;  %v349_v49 = vld [vmem:[%s1134_s23 + $0x180] sm:$0xff] }
  0x62   : > { %v348_v50 = vld [vmem:[%s1134_s23 + $0x178] sm:$0xff]  ;;  %v347_v51 = vld [vmem:[%s1134_s23 + $0x170] sm:$0xff]  ;;  %v346_v52 = vld [vmem:[%s1134_s23 + $0x168] sm:$0xff] }
  0x63   : > { %374 = vmatpush1.xpose.msra.mxu0 %v323_v9  ;;  %683 = vmatpush1.xpose.msra.mxu1 %v323_v9  ;;  %v345_v53 = vld [vmem:[%s1134_s23 + $0x160] sm:$0xff]  ;;  %v344_v54 = vld [vmem:[%s1134_s23 + $0x158] sm:$0xff]  ;;  %v343_v55 = vld [vmem:[%s1134_s23 + $0x150] sm:$0xff] }
  0x64   : > { %375 = vmatprep.subr.mxu0 %v322_v10  ;;  %652 = vmatprep.subr.mxu1 %v322_v10  ;;  %v342_v56 = vld [vmem:[%s1134_s23 + $0x148] sm:$0xff]  ;;  %v341_v57 = vld [vmem:[%s1134_s23 + $0x140] sm:$0xff]  ;;  %v340_v58 = vld [vmem:[%s1134_s23 + $0x138] sm:$0xff] }
  0x65   : > { %v339_v59 = vld [vmem:[%s1134_s23 + $0x130] sm:$0xff]  ;;  %v338_v60 = vld [vmem:[%s1134_s23 + $0x128] sm:$0xff]  ;;  %v337_v61 = vld [vmem:[%s1134_s23 + $0x120] sm:$0xff] }
  0x66   : > { %v336_v62 = vld [vmem:[%s1134_s23 + $0x118] sm:$0xff]  ;;  %v335_v63 = vld [vmem:[%s1134_s23 + $0x110] sm:$0xff]  ;;  %v334_v0 = vld [vmem:[%s1134_s23 + $0x108] sm:$0xff] }
  0x67   : > { %376 = vmatpush1.xpose.msra.mxu0 %v321_v11  ;;  %684 = vmatpush1.xpose.msra.mxu1 %v321_v11  ;;  %v333_v1 = vld [vmem:[%s1134_s23 + $0x100] sm:$0xff]  ;;  %v299_v3 = vld [vmem:[#allocation2 + $0x10] sm:$0xff] }
  0x68   : > { %377 = vmatprep.subr.mxu0 %v320_v12  ;;  %653 = vmatprep.subr.mxu1 %v320_v12  ;;  %v297_v2 = vld [vmem:[#allocation2] sm:$0xff] }
  0x69   : > { %v457_v7 = vld [vmem:[%s250_s22] sm:$0x3] }
  0x6a   : > { %v462_v9 = vrot.slane %v457_v7, %v461_v6  ;;  %v466_v12 = vrot.slane %v457_v7, %v465_v8 }
  0x6b   : > { %378 = vmatpush1.xpose.msra.mxu0 %v319_v15  ;;  %685 = vmatpush1.xpose.msra.mxu1 %v319_v15 }
  0x6c   : > { %379 = vmatprep.subr.mxu0 %v318_v16  ;;  %654 = vmatprep.subr.mxu1 %v318_v16 }
  0x6f   : > { %380 = vmatpush1.xpose.msra.mxu0 %v317_v17  ;;  %686 = vmatpush1.xpose.msra.mxu1 %v317_v17 }
  0x70   : > { %381 = vmatprep.subr.mxu0 %v316_v18  ;;  %655 = vmatprep.subr.mxu1 %v316_v18 }
  0x73   : > { %382 = vmatpush1.xpose.msra.mxu0 %v315_v19  ;;  %687 = vmatpush1.xpose.msra.mxu1 %v315_v19 }
  0x74   : > { %383 = vmatprep.subr.mxu0 %v314_v20  ;;  %656 = vmatprep.subr.mxu1 %v314_v20 }
  0x77   : > { %384 = vmatpush1.xpose.msra.mxu0 %v313_v21  ;;  %688 = vmatpush1.xpose.msra.mxu1 %v313_v21 }
  0x78   : > { %385 = vmatprep.subr.mxu0 %v312_v22  ;;  %657 = vmatprep.subr.mxu1 %v312_v22 }
  0x7b   : > { %386 = vmatpush1.xpose.msra.mxu0 %v311_v23  ;;  %689 = vmatpush1.xpose.msra.mxu1 %v311_v23 }
  0x7c   : > { %387 = vmatprep.subr.mxu0 %v310_v24  ;;  %658 = vmatprep.subr.mxu1 %v310_v24 }
  0x7f   : > { %388 = vmatpush1.xpose.msra.mxu0 %v309_v25  ;;  %690 = vmatpush1.xpose.msra.mxu1 %v309_v25 }
  0x80   : > { %389 = vmatprep.subr.mxu0 %v308_v26  ;;  %659 = vmatprep.subr.mxu1 %v308_v26 }
  0x83   : > { %390 = vmatpush1.xpose.msra.mxu0 %v307_v27  ;;  %691 = vmatpush1.xpose.msra.mxu1 %v307_v27 }
  0x84   : > { %391 = vmatprep.subr.mxu0 %v306_v28  ;;  %660 = vmatprep.subr.mxu1 %v306_v28 }
  0x87   : > { %392 = vmatpush1.xpose.msra.mxu0 %v305_v29  ;;  %692 = vmatpush1.xpose.msra.mxu1 %v305_v29 }
  0x88   : > { %393 = vmatprep.subr.mxu0 %v304_v30  ;;  %661 = vmatprep.subr.mxu1 %v304_v30 }
  0x8b   : > { %394 = vmatpush1.xpose.msra.mxu0 %v303_v31  ;;  %693 = vmatpush1.xpose.msra.mxu1 %v303_v31 }
  0x8c   : > { %395 = vmatprep.subr.mxu0 %v302_v32  ;;  %662 = vmatprep.subr.mxu1 %v302_v32 }
  0x8f   : > { %396 = vmatpush1.xpose.msra.mxu0 %v301_v33  ;;  %694 = vmatpush1.xpose.msra.mxu1 %v301_v33 }
  0x90   : > { %397 = vmatprep.subr.mxu0 %v364_v34  ;;  %663 = vmatprep.subr.mxu1 %v364_v34 }
  0x93   : > { %398 = vmatpush2.xpose.msra.mxu0 %v363_v35  ;;  %695 = vmatpush2.xpose.msra.mxu1 %v363_v35 }
  0x94   : > { %399 = vmatprep.subr.mxu0 %v362_v36  ;;  %664 = vmatprep.subr.mxu1 %v362_v36 }
  0x97   : > { %400 = vmatpush2.xpose.msra.mxu0 %v361_v37  ;;  %696 = vmatpush2.xpose.msra.mxu1 %v361_v37 }
  0x98   : > { %401 = vmatprep.subr.mxu0 %v360_v38  ;;  %665 = vmatprep.subr.mxu1 %v360_v38 }
  0x9b   : > { %402 = vmatpush2.xpose.msra.mxu0 %v359_v39  ;;  %697 = vmatpush2.xpose.msra.mxu1 %v359_v39 }
  0x9c   : > { %403 = vmatprep.subr.mxu0 %v358_v40  ;;  %666 = vmatprep.subr.mxu1 %v358_v40 }
  0x9f   : > { %404 = vmatpush2.xpose.msra.mxu0 %v357_v41  ;;  %698 = vmatpush2.xpose.msra.mxu1 %v357_v41 }
  0xa0   : > { %405 = vmatprep.subr.mxu0 %v356_v42  ;;  %667 = vmatprep.subr.mxu1 %v356_v42 }
  0xa3   : > { %406 = vmatpush2.xpose.msra.mxu0 %v355_v43  ;;  %699 = vmatpush2.xpose.msra.mxu1 %v355_v43 }
  0xa4   : > { %407 = vmatprep.subr.mxu0 %v354_v44  ;;  %668 = vmatprep.subr.mxu1 %v354_v44 }
  0xa7   : > { %408 = vmatpush2.xpose.msra.mxu0 %v353_v45  ;;  %700 = vmatpush2.xpose.msra.mxu1 %v353_v45 }
  0xa8   : > { %409 = vmatprep.subr.mxu0 %v352_v46  ;;  %669 = vmatprep.subr.mxu1 %v352_v46 }
  0xab   : > { %410 = vmatpush2.xpose.msra.mxu0 %v351_v47  ;;  %701 = vmatpush2.xpose.msra.mxu1 %v351_v47 }
  0xac   : > { %411 = vmatprep.subr.mxu0 %v350_v48  ;;  %670 = vmatprep.subr.mxu1 %v350_v48 }
  0xaf   : > { %412 = vmatpush2.xpose.msra.mxu0 %v349_v49  ;;  %702 = vmatpush2.xpose.msra.mxu1 %v349_v49 }
  0xb0   : > { %413 = vmatprep.subr.mxu0 %v348_v50  ;;  %671 = vmatprep.subr.mxu1 %v348_v50 }
  0xb3   : > { %414 = vmatpush2.xpose.msra.mxu0 %v347_v51  ;;  %703 = vmatpush2.xpose.msra.mxu1 %v347_v51 }
  0xb4   : > { %415 = vmatprep.subr.mxu0 %v346_v52  ;;  %672 = vmatprep.subr.mxu1 %v346_v52 }
  0xb7   : > { %416 = vmatpush2.xpose.msra.mxu0 %v345_v53  ;;  %704 = vmatpush2.xpose.msra.mxu1 %v345_v53 }
  0xb8   : > { %417 = vmatprep.subr.mxu0 %v344_v54  ;;  %673 = vmatprep.subr.mxu1 %v344_v54 }
  0xbb   : > { %418 = vmatpush2.xpose.msra.mxu0 %v343_v55  ;;  %705 = vmatpush2.xpose.msra.mxu1 %v343_v55 }
  0xbc   : > { %419 = vmatprep.subr.mxu0 %v342_v56  ;;  %674 = vmatprep.subr.mxu1 %v342_v56 }
  0xbf   : > { %420 = vmatpush2.xpose.msra.mxu0 %v341_v57  ;;  %706 = vmatpush2.xpose.msra.mxu1 %v341_v57 }
  0xc0   : > { %421 = vmatprep.subr.mxu0 %v340_v58  ;;  %675 = vmatprep.subr.mxu1 %v340_v58 }
  0xc3   : > { %422 = vmatpush2.xpose.msra.mxu0 %v339_v59  ;;  %707 = vmatpush2.xpose.msra.mxu1 %v339_v59 }
  0xc4   : > { %423 = vmatprep.subr.mxu0 %v338_v60  ;;  %676 = vmatprep.subr.mxu1 %v338_v60 }
  0xc7   : > { %424 = vmatpush2.xpose.msra.mxu0 %v337_v61  ;;  %708 = vmatpush2.xpose.msra.mxu1 %v337_v61 }
  0xc8   : > { %425 = vmatprep.subr.mxu0 %v336_v62  ;;  %677 = vmatprep.subr.mxu1 %v336_v62 }
  0xcb   : > { %426 = vmatpush2.xpose.msra.mxu0 %v335_v63  ;;  %709 = vmatpush2.xpose.msra.mxu1 %v335_v63 }
  0xcc   : > { %427 = vmatprep.subr.mxu0 %v334_v0  ;;  %678 = vmatprep.subr.mxu1 %v334_v0 }
  0xcf   : > { %428 = vmatpush2.xpose.msra.mxu0 %v333_v1  ;;  %710 = vmatpush2.xpose.msra.mxu1 %v333_v1 }
  0xd2   : > { %430 = vmatmul.mubr.f32.vlgmr.msra.gmra.mxu0 %v297_v2  ;;  %436 = vmatmul.mubr.f32.vlgmr.msra.gmra.mxu1 %v299_v3 }
 0x192   : > { %v431_v10 = vpop.f32.mrf.mxu0  ;;  %v437_v11 = vpop.f32.mrf.mxu1 }
 0x193   : > { %v469_v15 = vsub.f32 %v431_v10, %v462_v9  ;;  %v471_v16 = vsub.f32 %v437_v11, %v462_v9 }
 0x194   : > { %v433_v13 = vpop.f32.mrf.mxu0  ;;  %v439_v14 = vpop.f32.mrf.mxu1 }
 0x195   : > { %473 = vst [vmem:[%s277_s8] sm:$0xff] %v469_v15  ;;  %475 = vst [vmem:[%s277_s8 + $0x10] sm:$0xff] %v471_v16  ;;  %v470_v17 = vsub.f32 %v433_v13, %v466_v12  ;;  %v472_v18 = vsub.f32 %v439_v14, %v466_v12 }
 0x197   : > { %474 = vst [vmem:[%s277_s8 + $0x8] sm:$0xff] %v470_v17  ;;  %476 = vst [vmem:[%s277_s8 + $0x18] sm:$0xff] %v472_v18 }
 0x198   : > { %890 = shalt.err (!%p887_p8)
}
 0x199   : > { %s891_s10 = scalar_lea.hbm %s1210_s4, 512  ;;  %s895_s6 = scalar_lea.hbm %s1263_s3, 1024 }
 0x19a   : > { %p892_p12 = scmp.ne.s32.totalorder %s1210_s4, %s891_s10  ;;  %p896_p1 = scmp.lt.s32.totalorder %s1210_s4, %s1263_s3 }
 0x19b   : > { %p897_p5 = scmp.lt.s32.totalorder %s895_s6, %s891_s10 }
 0x19c   : > { %p893_p13 = pnand %p892_p12, %p1280_p2 }
 0x19d   : > { %p898_p7 = por %p897_p5, %p896_p1 }
 0x19e   : > { %p894_p6 = pneg %p893_p13 }
 0x1a0   : > { %p899_p11 = pnand %p898_p7, %p894_p6 }
 0x1a2   : > { %902 = shalt.err (!%p899_p11)
}
 0x1a3   : > { %s969_s27 = smov 256   ;;  %s970_s8 = smov 512  }
 0x1a4   : > { %s971_s28 = smov 16  }
 0x1a5   : > { %719 = dma.vmem_to_hbm [thread:$0]  (%p1280_p2), %s1212_s21, 512, %s1210_s4, %s478_s15, %s969_s27, %s970_s8, %s971_s28  }
 0x1a6 PF: > { %s509_s30 = sand.u32 1, %s941_s12   ;;  %p1281_p9 = scmp.ne.s32.totalorder %s1273_s26, 0 }
 0x1a7   : > { %p1282_p10 = scmp.ge.s32.totalorder %s961_s17, 2  ;;  %s510_s7 = scalar_lea.sflag [#allocation4], %s509_s30 }
 0x1a9   : > { %p733_p0 = pnand %p1282_p10, %p1281_p9 }
 0x1ab   : > { %p734_p4 = pneg %p733_p0 }
 0x1ad   : > { %936 = dma.done.wait (%p734_p4), %s510_s7, 512  }
 0x1ae   : > { %938 = vsyncadd (%p734_p4), %s510_s7, 4294966784  ;;  %s20_s17 = sadd.s32 1, %s961_s17   ;;  %s1283_s12 = smov %s945_s13 }
 0x1af   : > { %p17_p3 = scmp.ge.s32.totalorder %s20_s17, 4   ;;  %s1284_s13 = smov %s949_s14 }
 0x1b0   : > { %s1285_s14 = smov %s1043_s24  ;;  %s1286_s15 = smov %s957_s16 }
 0x1b1   : > { %s1287_s16 = smov %s1289_s18  ;;  %19 = sbr.rel (!%p17_p3) target bundleno = 7 (0x7), region = 102 }
 0x1b6   :  { %515 = vsyncpa [#allocation3], 1 }
 0x1b7   :  { %517 = vsyncpa [#allocation3 + $0x1], 1 }
 0x1b8   :  { %518 = vsyncpa [#allocation6], 1 }
 0x1b9   :  { %520 = vsyncpa [#allocation6 + $0x1], 1 }
 0x1ba   :  { %521 = vsyncpa [#allocation4], 1 }
 0x1bb   :  { %523 = vsyncpa [#allocation4 + $0x1], 1 }

</bundles_post_ra>
